<compile_context>
chip_gen: v7x
topology: tpu7x:2x2x1
jax: 0.10.0
libtpu: 0.0.40
codegen_flags: <defaults>
</compile_context>

<pallas_src>
import jax
import jax.numpy as jnp
from jax.experimental import pallas as pl
from jax.experimental.pallas import tpu as pltpu


def _scale_interleaved_kernel(x_ref, s_ref, o_ref):
    # x_ref: (R, G)    R rows of G = 128//N consecutive batch elements
    # s_ref: (G, 128)  selector-and-scale matrix: S[g, g*N + j] = w[j], else 0
    # o_ref: (R, 128)  final row-major (M, N) output, folded to 128 lanes
    #
    # out[r, l] = x[r, l//N] * w[l % N] == (x @ S)[r, l]
    o_ref[...] = jnp.dot(
        x_ref[...], s_ref[...], preferred_element_type=jnp.float32
    ).astype(o_ref.dtype)


def _round_up(x, m):
    return ((x + m - 1) // m) * m


def _scale_pallas(x2d, sel, out_rows, r_blk, grid):
    """x2d: (out_rows, G), sel: (G, 128). Returns (out_rows, 128)."""
    g = x2d.shape[1]
    out_dtype = sel.dtype
    itemsize = jnp.dtype(out_dtype).itemsize

    cost = pl.CostEstimate(
        flops=2 * out_rows * g * 128,
        transcendentals=0,
        bytes_accessed=(
            out_rows * g * jnp.dtype(x2d.dtype).itemsize
            + g * 128 * itemsize
            + out_rows * 128 * itemsize
        ),
    )

    return pl.pallas_call(
        _scale_interleaved_kernel,
        out_shape=jax.ShapeDtypeStruct((out_rows, 128), out_dtype),
        grid_spec=pl.GridSpec(
            grid=(grid,),
            in_specs=[
                # batch tile: (r_blk, G); G equals the full last dim (exempt),
                # r_blk is a multiple of 8 (or equals the full extent).
                pl.BlockSpec((r_blk, g), lambda i: (i, 0)),
                # tiny selector matrix, resident every step (full-array block).
                pl.BlockSpec((g, 128), lambda i: (0, 0)),
            ],
            out_specs=pl.BlockSpec((r_blk, 128), lambda i: (i, 0)),
        ),
        compiler_params=pltpu.CompilerParams(
            # "parallel" lets v7x's two TensorCores split the grid steps.
            dimension_semantics=("parallel",),
            # Safe on all generations (v5e/v6e phys 128 MiB, v7x phys 64 MiB);
            # raises v5e's 16 MiB default, matches v6e/v7x defaults.
            vmem_limit_bytes=32 * 1024 * 1024,
        ),
        cost_estimate=cost,
    )(x2d, sel)


def scale_forward(x, weight, *, block_rows=131072, use_kernel=None):
    """Forward of torch `Scale(num_scales)` (= nn.Linear(1, num_scales, bias=False)).

    x: (..., 1); weight: (num_scales, 1) in torch Linear layout.
    Returns (..., num_scales) == x @ weight.T.
    """
    assert x.shape[-1] == 1, "Scale expects last dim == 1 (Linear in_features=1)"
    n = weight.shape[0]
    lead = x.shape[:-1]
    m = 1
    for d in lead:
        m *= d
    out_dtype = jnp.promote_types(x.dtype, weight.dtype)

    if m == 0:
        return jnp.zeros((*lead, n), dtype=out_dtype)

    kernel_supported = (1 <= n <= 128) and (128 % n == 0)
    if use_kernel is None:
        # The kernel only pays off once it runs several multi-MB, DMA-bound grid
        # steps; below that, XLA's fused broadcast-multiply is at least as fast.
        use_kernel = kernel_supported and m >= 65536

    if not (use_kernel and kernel_supported):
        # TODO(synk): num_scales that does not divide 128 falls back to plain JAX
        # (XLA's single fused pass over the M*N output), not a Pallas kernel.
        out2d = x.reshape(m, 1).astype(out_dtype) * weight.reshape(1, n).astype(out_dtype)
        return out2d.reshape(*lead, n)

    g = 128 // n                           # batch elements per 128-lane output row
    m_pad = _round_up(m, g)                # minimal pad (< 128 rows), NOT up to tile
    x_flat = x.reshape(m)
    if m_pad != m:
        x_flat = jnp.pad(x_flat, (0, m_pad - m))
    x2d = x_flat.reshape(m_pad // g, g).astype(out_dtype)

    # Selector-and-scale matrix: S[g', g'*N + j] = w[j]; built once, tiny (G x 128).
    w_row = weight.reshape(1, n).astype(out_dtype)
    sel = jnp.kron(jnp.eye(g, dtype=out_dtype), w_row)        # (g, 128)

    quantum = 8 * g                        # keeps the block sublane dim a multiple of 8
    if m_pad <= block_rows:
        tm = m_pad                         # single block == full array dims (exempt)
    else:
        tm = max((block_rows // quantum) * quantum, quantum)
    grid = pl.cdiv(m_pad, tm)              # ragged last block is masked by Pallas
    r_blk = tm // g
    out_rows = m_pad // g

    out = _scale_pallas(x2d, sel, out_rows, r_blk, grid)      # (out_rows, 128)

    out_flat = out.reshape(m_pad * n)      # free metadata when m_pad == m
    if m_pad != m:
        out_flat = out_flat[: m * n]       # drop the (< 128*N) pad tail
    return out_flat.reshape(*lead, n)


if __name__ == "__main__":
    key = jax.random.PRNGKey(0)
    kw, kx1, kx2, kx3 = jax.random.split(key, 4)

    num_scales = 4
    # nn.Linear(1, num_scales, bias=False) init bound for fan_in=1 -> U(-1, 1).
    weight = jax.random.uniform(kw, (num_scales, 1), jnp.float32, minval=-1.0, maxval=1.0)

    def ref(xv):
        return xv @ weight.T

    # 1) Tiny batch, single block; force the kernel path.
    x_small = jax.random.normal(kx1, (8, 1), jnp.float32)
    out_small = jax.block_until_ready(scale_forward(x_small, weight, use_kernel=True))
    assert out_small.shape == (8, num_scales)
    assert jnp.allclose(out_small, ref(x_small), rtol=1e-4, atol=1e-6), "mismatch (small)"

    # 2) Multi-dim leading shape, M not a multiple of 128//N, multi-step grid with a
    #    ragged last block (exercises partial-block masking and the pad/slice path).
    x_mid = jax.random.normal(kx2, (2, 157, 1), jnp.float32)
    out_mid = jax.block_until_ready(
        scale_forward(x_mid, weight, block_rows=256, use_kernel=True))
    assert out_mid.shape == (2, 157, num_scales)
    assert jnp.allclose(out_mid, ref(x_mid), rtol=1e-4, atol=1e-6), "mismatch (mid)"

    # 3) Evenly tiled multi-step grid (no padding, no slicing).
    x_big = jax.random.normal(kx3, (4096, 1), jnp.float32)
    out_big = jax.block_until_ready(
        scale_forward(x_big, weight, block_rows=1024, use_kernel=True))
    assert out_big.shape == (4096, num_scales)
    assert jnp.allclose(out_big, ref(x_big), rtol=1e-4, atol=1e-6), "mismatch (big)"

    print("KERNEL_OK")
</pallas_src>

<mosaic_0001>
module attributes {stable_mosaic.version = 11 : i64} {
  func.func @_scale_interleaved_kernel(%arg0: i32, %arg1: memref<1x32xf32, #tpu.memory_space<vmem>>, %arg2: memref<32x128xf32, #tpu.memory_space<vmem>>, %arg3: memref<1x128xf32, #tpu.memory_space<vmem>>) attributes {dimension_semantics = [#tpu.dimension_semantics<parallel>], iteration_bounds = array<i64: 1>, scalar_prefetch = 0 : i64, scratch_operands = 0 : i64, tpu.core_type = #tpu.core_type<tc>, window_params = [{transform_indices = @transform_0, window_bounds = array<i64: 1, 32>}, {pipeline_mode = #tpu.pipeline_mode<synchronous>, transform_indices = @transform_1, window_bounds = array<i64: 32, 128>}, {transform_indices = @transform_2, window_bounds = array<i64: 1, 128>}]} {
    %c0 = arith.constant 0 : index
    %c0_0 = arith.constant 0 : index
    %0 = vector.load %arg1[%c0, %c0_0] : memref<1x32xf32, #tpu.memory_space<vmem>>, vector<1x32xf32>
    %c0_1 = arith.constant 0 : index
    %c0_2 = arith.constant 0 : index
    %1 = vector.load %arg2[%c0_1, %c0_2] : memref<32x128xf32, #tpu.memory_space<vmem>>, vector<32x128xf32>
    %cst = arith.constant dense<0.000000e+00> : vector<1x128xf32>
    %2 = tpu.matmul %0, %1, %cst {dimension_numbers = #tpu.dot_dimension_numbers<[1], [0], [0], [1], [0, 0, 1, 1], [], []>} : vector<1x32xf32>, vector<32x128xf32>, vector<1x128xf32> -> vector<1x128xf32>
    %c0_3 = arith.constant 0 : index
    %c0_4 = arith.constant 0 : index
    %3 = vector.load %arg3[%c0_3, %c0_4] : memref<1x128xf32, #tpu.memory_space<vmem>>, vector<1x128xf32>
    tpu.vector_store %arg3[%c0_3, %c0_4], %2 {strides = array<i32>} : memref<1x128xf32, #tpu.memory_space<vmem>>, vector<1x128xf32>,
    return
  }
  func.func @transform_0(%arg0: i32) -> (i32, i32) {
    %c0_i32 = arith.constant 0 : i32
    %c0_i32_0 = arith.constant 0 : i32
    return %arg0, %c0_i32 : i32, i32
  }
  func.func @transform_1(%arg0: i32) -> (i32, i32) {
    %c0_i32 = arith.constant 0 : i32
    %c0_i32_0 = arith.constant 0 : i32
    %c0_i32_1 = arith.constant 0 : i32
    return %c0_i32, %c0_i32_0 : i32, i32
  }
  func.func @transform_2(%arg0: i32) -> (i32, i32) {
    %c0_i32 = arith.constant 0 : i32
    %c0_i32_0 = arith.constant 0 : i32
    return %arg0, %c0_i32 : i32, i32
  }
}

</mosaic_0001>

<bundles_post_ra>
// kernel: tpu_custom_call.1
= control target key start
LH: loop header
LB: loop body
LE: loop exit
PB: predicated region body
PF: predicated region fallthrough
CT: control target
= control target key end

     0   :  { %7 = vsyncpa [#allocation3], 0  ;;  %s303_s0 = inlined_call_operand.hbm [shape: f32[1,32], index: 0, kind: input, shape index: {}]   ;;  %s304_s1 = inlined_call_operand.hbm [shape: f32[32,128], index: 1, kind: input, shape index: {}]   ;;  %s305_s2 = inlined_call_operand.hbm [shape: f32[1,128], index: 2, kind: output, shape index: {}]  }
   0x1   :  { %8 = vsyncpa [#allocation6], 0 }
   0x2   :  { %9 = vsyncpa [#allocation4], 0  ;;  %s237_s9 = smov [#allocation2]   ;;  %s238_s11 = smov [#allocation5]  }
   0x3   :  { %s16_s10 = sshll.u32 %s237_s9, 4  ;;  %s25_s12 = sshll.u32 %s238_s11, 4  ;;  %s17_s10 = int_to_ptr.vmem [resolvable:$true] %s16_s10  ;;  %s260_s12 = int_to_ptr.vmem [resolvable:$true] %s25_s12 }
   0x4   :  { %s165_s15 = scalar_lea.hbm %s303_s0, 16 }
   0x5   :  { %p166_p0 = scmp.ne.s32.totalorder %s303_s0, %s165_s15  ;;  %p169_p1 = scmp.lt.u32.totalorder %s165_s15, %s303_s0 }
   0x7   :  { %p171_p2 = pnand %p169_p1, %p166_p0 }
   0x9   :  { %174 = shalt.err (!%p171_p2)
}
   0xa   :  { %s175_s20 = scalar_lea.vmem %s17_s10, 16  ;;  %s179_s21 = scalar_lea.vmem %s17_s10, 32 }
   0xb   :  { %p176_p3 = scmp.ne.s32.totalorder %s17_s10, %s175_s20  ;;  %p180_p4 = scmp.lt.s32.totalorder %s17_s10, %s17_s10 }
   0xc   :  { %p181_p5 = scmp.lt.s32.totalorder %s179_s21, %s175_s20 }
   0xe   :  { %p182_p6 = por %p181_p5, %p180_p4 }
  0x10   :  { %p183_p7 = pnand %p182_p6, %p176_p3 }
  0x12   :  { %186 = shalt.err (!%p183_p7)
}
  0x13   :  { %19 = dma.hbm_to_vmem [thread:$0]  %s303_s0, 16, %s17_s10, [#allocation3]  }
  0x14   :  { %s187_s26 = scalar_lea.hbm %s304_s1, 512 }
  0x15   :  { %p188_p8 = scmp.ne.s32.totalorder %s304_s1, %s187_s26  ;;  %p191_p9 = scmp.lt.u32.totalorder %s187_s26, %s304_s1 }
  0x17   :  { %p193_p10 = pnand %p191_p9, %p188_p8 }
  0x19   :  { %196 = shalt.err (!%p193_p10)
}
  0x1a   :  { %s197_s3 = scalar_lea.vmem %s260_s12, 512  ;;  %p202_p12 = scmp.lt.s32.totalorder %s260_s12, %s260_s12 }
  0x1b   :  { %p198_p11 = scmp.ne.s32.totalorder %s260_s12, %s197_s3  ;;  %p203_p13 = scmp.lt.s32.totalorder %s197_s3, %s197_s3 }
  0x1d   :  { %p204_p0 = por %p203_p13, %p202_p12 }
  0x1f   :  { %p205_p1 = pnand %p204_p0, %p198_p11 }
  0x21   :  { %208 = shalt.err (!%p205_p1)
}
  0x22   :  { %s239_s0 = smov 128   ;;  %s240_s4 = smov 8  }
  0x23   :  { %31 = dma.hbm_to_vmem [thread:$0]  %s304_s1, 512, %s260_s12, [#allocation6], %s239_s0, %s239_s0, %s240_s4  }
  0x24   :  { %231 = dma.done.wait [#allocation3], 16  }
  0x25   :  { %232 = vsyncadd [#allocation3], 4294967280 }
  0x26   :  { %233 = dma.done.wait [#allocation6], 512  }
  0x27   :  { %234 = vsyncadd [#allocation6], 4294966784  ;;  %v241_v0 = vmov 0.0|0.0   ;;  %vm242_vm0 = vmmov 0   ;;  %v243_v1 = vmov 0.0   ;;  %v39_v2 = vld [vmem:[#allocation5] sm:$0xff] }
  0x28   :  { %151 = vmatprep.subr.bf16.mxu0 %v241_v0  ;;  %148 = vmatprep.mubr.msk.f32.mxu0 %vm242_vm0, %v243_v1  ;;  %v40_v3 = vld [vmem:[#allocation5 + $0x8] sm:$0xff]  ;;  %v41_v4 = vld [vmem:[#allocation5 + $0x10] sm:$0xff]  ;;  %v42_v6 = vld [vmem:[#allocation5 + $0x18] sm:$0xff]  ;;  %vm43_vm1 = vcmask 261120   ;;  %s244_s1 = smov [#allocation7]  }
  0x29   :  { %v152_v5 = vpack.c.bf16 %v40_v3, %v39_v2  ;;  %v155_v7 = vpack.c.bf16 %v42_v6, %v41_v4  ;;  %v38_v8 = vld [vmem:[#allocation2] sm:$0x1]  ;;  %s124_s7 = sshll.u32 %s244_s1, 4  ;;  %s125_s7 = int_to_ptr.vmem [resolvable:$true] %s124_s7 }
  0x2a   :  { %s209_s8 = scalar_lea.vmem %s125_s7, 16  ;;  %s213_s9 = scalar_lea.vmem %s125_s7, 32 }
  0x2b   :  { %153 = vmatpush3.bf16.msra.mxu0 %v152_v5  ;;  %p210_p2 = scmp.ne.s32.totalorder %s125_s7, %s209_s8  ;;  %p214_p3 = scmp.lt.s32.totalorder %s125_s7, %s125_s7 }
  0x2c   :  { %154 = vmatprep.subr.bf16.mxu0 %v241_v0  ;;  %p215_p4 = scmp.lt.s32.totalorder %s213_s9, %s209_s8 }
  0x2e   :  { %p216_p5 = por %p215_p4, %p214_p3 }
  0x2f   :  { %156 = vmatpush3.bf16.msra.mxu0 %v155_v7 }
  0x30   :  { %p217_p6 = pnand %p216_p5, %p210_p2 }
  0x32   :  { %149 = vmatmul.mubr.msk.f32.vlgmr.msra.gmra.mrb[0].mxu0 %vm43_vm1, %v38_v8 }
 0x105   :  { %v113_v9 = vpop.f32.mrb[0].mxu0 }
 0x106   :  { %117 = vst [vmem:[#allocation7] sm:$0x1] %v113_v9  ;;  %v150_v10 = vpop.f32.mrb[1].mxu0 }
 0x107   :  { %220 = shalt.err (!%p217_p6)
}
 0x108   :  { %s221_s12 = scalar_lea.hbm %s305_s2, 16 }
 0x109   :  { %p222_p7 = scmp.ne.s32.totalorder %s305_s2, %s221_s12  ;;  %p225_p8 = scmp.lt.u32.totalorder %s221_s12, %s305_s2 }
 0x10b   :  { %p227_p9 = pnand %p225_p8, %p222_p7 }
 0x10d   :  { %230 = shalt.err (!%p227_p9)
}
 0x10e   :  { %127 = dma.vmem_to_hbm [thread:$0]  %s125_s7, 16, %s305_s2, [#allocation4]  }
 0x10f   :  { %235 = dma.done.wait [#allocation4], 16  }
 0x110   :  { %236 = vsyncadd [#allocation4], 4294967280 }
 0x111   :  { %131 = vsyncpa [#allocation3], 1 }
 0x112   :  { %132 = vsyncpa [#allocation6], 1 }
 0x113   :  { %133 = vsyncpa [#allocation4], 1 }

</bundles_post_ra>
